<compile_context>
chip_gen: v7x
topology: tpu7x:2x2x1
jax: 0.10.0
libtpu: 0.0.40
codegen_flags: <defaults>
</compile_context>

<pallas_src>
import functools

import jax
import jax.numpy as jnp
from jax.experimental import pallas as pl
from jax.experimental.pallas import tpu as pltpu

_SUBLANE = 8


def _round_up(n, m):
    return (n + m - 1) // m * m


def detect_num_tensorcores():
    """Best-effort TC count per chip (v7x: 2, v5e/v6e: 1); safe fallback is 1."""
    try:
        d = jax.devices()[0]
        for attr in ("num_cores", "core_count"):
            n = getattr(d, attr, None)
            if isinstance(n, int) and n > 0:
                return min(n, 2)
    except Exception:
        pass
    return 1


def mlp_kernel(x_ref, w1_ref, b1_ref, w2_ref, b2_ref, w3_ref, b3_ref, o_ref):
    """relu(x@w1+b1) -> relu(.@w2+b2) -> fc3 -> sigmoid, for one batch tile."""
    cdt = w1_ref.dtype                          # MXU operand dtype (f32 or bf16)
    x = x_ref[...].astype(cdt)                  # in-kernel cast; x stays f32 in HBM
    h = jnp.dot(x, w1_ref[...], preferred_element_type=jnp.float32) + b1_ref[...]
    h = jnp.maximum(h, 0.0)
    h = jnp.dot(h.astype(cdt), w2_ref[...],
                preferred_element_type=jnp.float32) + b2_ref[...]
    h = jnp.maximum(h, 0.0)
    if o_ref.shape[-1] == 1:
        # fc3 (h2 -> 1) is a per-row dot product: VPU multiply + XLU lane reduction.
        # w3_ref is a (1, h2) row; avoids an MXU push computing 127 dead columns and
        # keeps the output un-padded at (blk, 1).
        z = jnp.sum(h * w3_ref[...], axis=-1, keepdims=True) + b3_ref[...]
    else:
        z = jnp.dot(h.astype(cdt), w3_ref[...],
                    preferred_element_type=jnp.float32) + b3_ref[...]
    o_ref[...] = jax.nn.sigmoid(z).astype(o_ref.dtype)


def prepare_params(params, use_bf16=False):
    """One-time parameter prep (layout + dtype).  Do NOT call per forward pass.

    params: dict of w1,b1,w2,b2,w3,b3 with weights stored as (in_features, out_features)
    (transpose of PyTorch nn.Linear's (out, in) layout).
    """
    cdt = jnp.bfloat16 if use_bf16 else jnp.float32
    out_dim = params["w3"].shape[1]
    prepped = {
        "w1": params["w1"].astype(cdt),
        "b1": params["b1"].astype(jnp.float32).reshape(1, -1),
        "w2": params["w2"].astype(cdt),
        "b2": params["b2"].astype(jnp.float32).reshape(1, -1),
        "b3": params["b3"].astype(jnp.float32).reshape(1, -1),
    }
    if out_dim == 1:
        # Store fc3's single weight column as a (1, h2) row for the VPU-reduce path
        # (kept f32: the multiply runs against the f32 activations).
        prepped["w3"] = params["w3"].reshape(1, -1).astype(jnp.float32)
    else:
        prepped["w3"] = params["w3"].astype(cdt)
    return prepped


@functools.partial(jax.jit, static_argnames=("num_cores", "max_block_rows"))
def mlp_forward(x, prepped, num_cores=1, max_block_rows=4096):
    """x: (B, input_size) f32.  prepped: output of prepare_params."""
    B, in_dim = x.shape
    h1 = prepped["w1"].shape[1]
    h2 = prepped["w2"].shape[1]
    out_dim = prepped["b3"].shape[1]
    w3 = prepped["w3"]

    # --- batch tiling -----------------------------------------------------------
    # Single-TC chips (v5e/v6e): one big block for realistic B (per-step overhead is
    # pure loss).  Dual-TC v7x (num_cores=2): even number of steps so both cores work.
    # The x block stays f32 in VMEM, so sublane granularity 8 is always sufficient.
    gran = _SUBLANE
    steps = max(1, pl.cdiv(B, max_block_rows))
    if num_cores > 1 and B >= num_cores * gran:
        steps = _round_up(steps, num_cores)
    blk = _round_up(pl.cdiv(B, steps), gran)
    grid_steps = pl.cdiv(B, blk)
    Bp = grid_steps * blk
    xb = x if Bp == B else jnp.pad(x, ((0, Bp - B), (0, 0)))  # zero rows, sliced off

    # Weights/biases are grid-invariant (index_map always (0,0)) and tiny, so they
    # stay resident in VMEM across grid steps.
    in_specs = [
        pl.BlockSpec((blk, in_dim), lambda i: (i, 0)),   # x tile (batch-tiled)
        pl.BlockSpec((in_dim, h1), lambda i: (0, 0)),    # w1
        pl.BlockSpec((1, h1), lambda i: (0, 0)),         # b1
        pl.BlockSpec((h1, h2), lambda i: (0, 0)),        # w2
        pl.BlockSpec((1, h2), lambda i: (0, 0)),         # b2
        pl.BlockSpec(w3.shape, lambda i: (0, 0)),        # w3: (1,h2) row or (h2,out)
        pl.BlockSpec((1, out_dim), lambda i: (0, 0)),    # b3
    ]
    out_spec = pl.BlockSpec((blk, out_dim), lambda i: (i, 0))   # un-padded output

    out = pl.pallas_call(
        mlp_kernel,
        out_shape=jax.ShapeDtypeStruct((Bp, out_dim), jnp.float32),
        grid_spec=pltpu.PrefetchScalarGridSpec(
            num_scalar_prefetch=0,
            grid=(grid_steps,),
            in_specs=in_specs,
            out_specs=out_spec,
        ),
        compiler_params=pltpu.CompilerParams(
            # "parallel" lets a multi-step grid shard the batch across the two v7x TCs.
            dimension_semantics=("parallel",),
        ),
    )(xb, prepped["w1"], prepped["b1"], prepped["w2"], prepped["b2"], w3, prepped["b3"])

    # Only padded batch rows need removing; the output lanes are never padded.
    return out if Bp == B else out[:B]


def init_mlp_params(key, input_size, output_size):
    """PyTorch-default uniform init; weights stored as (in, out)."""
    dims = [(input_size, 32), (32, 128), (128, output_size)]
    params = {}
    for idx, (fan_in, fan_out) in enumerate(dims, start=1):
        key, kw, kb = jax.random.split(key, 3)
        bound = 1.0 / (fan_in ** 0.5)
        params[f"w{idx}"] = jax.random.uniform(
            kw, (fan_in, fan_out), jnp.float32, -bound, bound)
        params[f"b{idx}"] = jax.random.uniform(
            kb, (1, fan_out), jnp.float32, -bound, bound)
    return params


def mlp_reference(x, params):
    h = jnp.maximum(x @ params["w1"] + params["b1"], 0.0)
    h = jnp.maximum(h @ params["w2"] + params["b2"], 0.0)
    return jax.nn.sigmoid(h @ params["w3"] + params["b3"])


if __name__ == "__main__":
    key = jax.random.PRNGKey(0)
    key, kx_small, kx_odd, kx_big = jax.random.split(key, 4)

    input_size = 16   # |hidden state| + |node features| + |adjacency| (toy size)
    output_size = 1   # beta: probability the current node is the last node

    raw = init_mlp_params(key, input_size, output_size)
    params_f32 = prepare_params(raw, use_bf16=False)     # one-time prep (hoisted)
    params_bf16 = prepare_params(raw, use_bf16=True)

    # Tiny batch: single block, no padding, launch cost is the floor.
    x_small = jax.random.normal(kx_small, (8, input_size), jnp.float32)
    out_small = jax.block_until_ready(mlp_forward(x_small, params_f32))
    ref_small = mlp_reference(x_small, raw)
    assert out_small.shape == (8, output_size)
    assert jnp.allclose(out_small, ref_small, atol=1e-5, rtol=1e-5), "f32 small mismatch"

    # Odd batch: exercises zero-row padding + un-pad slice.
    x_odd = jax.random.normal(kx_odd, (5, input_size), jnp.float32)
    out_odd = jax.block_until_ready(mlp_forward(x_odd, params_f32))
    ref_odd = mlp_reference(x_odd, raw)
    assert out_odd.shape == (5, output_size)
    assert jnp.allclose(out_odd, ref_odd, atol=1e-5, rtol=1e-5), "f32 odd mismatch"

    # Larger batch, forced 2-step "parallel" grid (v7x dual-TC path; on single-TC
    # chips it is simply two grid steps and remains correct).
    x_big = jax.random.normal(kx_big, (512, input_size), jnp.float32)
    ref_big = mlp_reference(x_big, raw)
    out_big = jax.block_until_ready(mlp_forward(x_big, params_f32, num_cores=2))
    assert out_big.shape == (512, output_size)
    assert jnp.allclose(out_big, ref_big, atol=1e-5, rtol=1e-5), "f32 2-step mismatch"

    # Default grid choice for this chip (single block on v5e/v6e).
    out_auto = jax.block_until_ready(
        mlp_forward(x_big, params_f32, num_cores=detect_num_tensorcores()))
    assert jnp.allclose(out_auto, ref_big, atol=1e-5, rtol=1e-5), "f32 auto mismatch"

    # bf16 MXU operands (v6e/v7x fast path); looser tolerance vs. the f32 reference.
    out_bf16 = jax.block_until_ready(mlp_forward(x_big, params_bf16, num_cores=2))
    assert jnp.allclose(out_bf16, ref_big, atol=3e-2), "bf16 mismatch"

    print("KERNEL_OK")
</pallas_src>

<mosaic_0001>
module attributes {stable_mosaic.version = 11 : i64} {
  func.func @mlp_kernel(%arg0: i32, %arg1: memref<8x16xf32, #tpu.memory_space<vmem>>, %arg2: memref<16x32xf32, #tpu.memory_space<vmem>>, %arg3: memref<1x32xf32, #tpu.memory_space<vmem>>, %arg4: memref<32x128xf32, #tpu.memory_space<vmem>>, %arg5: memref<1x128xf32, #tpu.memory_space<vmem>>, %arg6: memref<1x128xf32, #tpu.memory_space<vmem>>, %arg7: memref<1x1xf32, #tpu.memory_space<vmem>>, %arg8: memref<8x1xf32, #tpu.memory_space<vmem>>) attributes {dimension_semantics = [#tpu.dimension_semantics<parallel>], iteration_bounds = array<i64: 1>, scalar_prefetch = 0 : i64, scratch_operands = 0 : i64, tpu.core_type = #tpu.core_type<tc>, window_params = [{transform_indices = @transform_0, window_bounds = array<i64: 8, 16>}, {pipeline_mode = #tpu.pipeline_mode<synchronous>, transform_indices = @transform_1, window_bounds = array<i64: 16, 32>}, {pipeline_mode = #tpu.pipeline_mode<synchronous>, transform_indices = @transform_2, window_bounds = array<i64: 1, 32>}, {pipeline_mode = #tpu.pipeline_mode<synchronous>, transform_indices = @transform_3, window_bounds = array<i64: 32, 128>}, {pipeline_mode = #tpu.pipeline_mode<synchronous>, transform_indices = @transform_4, window_bounds = array<i64: 1, 128>}, {pipeline_mode = #tpu.pipeline_mode<synchronous>, transform_indices = @transform_5, window_bounds = array<i64: 1, 128>}, {pipeline_mode = #tpu.pipeline_mode<synchronous>, transform_indices = @transform_6, window_bounds = array<i64: 1, 1>}, {transform_indices = @transform_7, window_bounds = array<i64: 8, 1>}]} {
    %c0 = arith.constant 0 : index
    %c0_0 = arith.constant 0 : index
    %0 = vector.load %arg1[%c0, %c0_0] : memref<8x16xf32, #tpu.memory_space<vmem>>, vector<8x16xf32>
    %c0_1 = arith.constant 0 : index
    %c0_2 = arith.constant 0 : index
    %1 = vector.load %arg2[%c0_1, %c0_2] : memref<16x32xf32, #tpu.memory_space<vmem>>, vector<16x32xf32>
    %cst = arith.constant dense<0.000000e+00> : vector<8x32xf32>
    %2 = tpu.matmul %0, %1, %cst {dimension_numbers = #tpu.dot_dimension_numbers<[1], [0], [0], [1], [0, 0, 1, 1], [], []>} : vector<8x16xf32>, vector<16x32xf32>, vector<8x32xf32> -> vector<8x32xf32>
    %c0_3 = arith.constant 0 : index
    %c0_4 = arith.constant 0 : index
    %3 = vector.load %arg3[%c0_3, %c0_4] : memref<1x32xf32, #tpu.memory_space<vmem>>, vector<1x32xf32>
    %4 = vector.broadcast %3 : vector<1x32xf32> to vector<8x32xf32>
    %5 = arith.addf %2, %4 : vector<8x32xf32>
    %cst_5 = arith.constant 0.000000e+00 : f32
    %6 = vector.broadcast %cst_5 : f32 to vector<8x32xf32>
    %7 = arith.maximumf %5, %6 : vector<8x32xf32>
    %c0_6 = arith.constant 0 : index
    %c0_7 = arith.constant 0 : index
    %8 = vector.load %arg4[%c0_6, %c0_7] : memref<32x128xf32, #tpu.memory_space<vmem>>, vector<32x128xf32>
    %cst_8 = arith.constant dense<0.000000e+00> : vector<8x128xf32>
    %9 = tpu.matmul %7, %8, %cst_8 {dimension_numbers = #tpu.dot_dimension_numbers<[1], [0], [0], [1], [0, 0, 1, 1], [], []>} : vector<8x32xf32>, vector<32x128xf32>, vector<8x128xf32> -> vector<8x128xf32>
    %c0_9 = arith.constant 0 : index
    %c0_10 = arith.constant 0 : index
    %10 = vector.load %arg5[%c0_9, %c0_10] : memref<1x128xf32, #tpu.memory_space<vmem>>, vector<1x128xf32>
    %11 = vector.broadcast %10 : vector<1x128xf32> to vector<8x128xf32>
    %12 = arith.addf %9, %11 : vector<8x128xf32>
    %cst_11 = arith.constant 0.000000e+00 : f32
    %13 = vector.broadcast %cst_11 : f32 to vector<8x128xf32>
    %14 = arith.maximumf %12, %13 : vector<8x128xf32>
    %c0_12 = arith.constant 0 : index
    %c0_13 = arith.constant 0 : index
    %15 = vector.load %arg6[%c0_12, %c0_13] : memref<1x128xf32, #tpu.memory_space<vmem>>, vector<1x128xf32>
    %16 = vector.broadcast %15 : vector<1x128xf32> to vector<8x128xf32>
    %17 = arith.mulf %14, %16 : vector<8x128xf32>
    %cst_14 = arith.constant dense<0.000000e+00> : vector<8xf32>
    %18 = vector.multi_reduction <add>, %17, %cst_14 [1] : vector<8x128xf32> to vector<8xf32>
    %19 = vector.shape_cast %18 : vector<8xf32> to vector<8x1xf32>
    %c0_15 = arith.constant 0 : index
    %c0_16 = arith.constant 0 : index
    %20 = vector.load %arg7[%c0_15, %c0_16] : memref<1x1xf32, #tpu.memory_space<vmem>>, vector<1x1xf32>
    %21 = vector.broadcast %20 : vector<1x1xf32> to vector<8x1xf32>
    %22 = arith.addf %19, %21 : vector<8x1xf32>
    %23 = arith.negf %22 : vector<8x1xf32>
    %24 = math.exp %23 : vector<8x1xf32>
    %cst_17 = arith.constant 1.000000e+00 : f32
    %25 = vector.broadcast %cst_17 : f32 to vector<8x1xf32>
    %26 = arith.addf %25, %24 : vector<8x1xf32>
    %27 = arith.divf %25, %26 : vector<8x1xf32>
    %c0_18 = arith.constant 0 : index
    %c0_19 = arith.constant 0 : index
    %28 = vector.load %arg8[%c0_18, %c0_19] : memref<8x1xf32, #tpu.memory_space<vmem>>, vector<8x1xf32>
    tpu.vector_store %arg8[%c0_18, %c0_19], %27 {strides = array<i32>} : memref<8x1xf32, #tpu.memory_space<vmem>>, vector<8x1xf32>,
    return
  }
  func.func @transform_0(%arg0: i32) -> (i32, i32) {
    %c0_i32 = arith.constant 0 : i32
    %c0_i32_0 = arith.constant 0 : i32
    return %arg0, %c0_i32 : i32, i32
  }
  func.func @transform_1(%arg0: i32) -> (i32, i32) {
    %c0_i32 = arith.constant 0 : i32
    %c0_i32_0 = arith.constant 0 : i32
    %c0_i32_1 = arith.constant 0 : i32
    return %c0_i32, %c0_i32_0 : i32, i32
  }
  func.func @transform_2(%arg0: i32) -> (i32, i32) {
    %c0_i32 = arith.constant 0 : i32
    %c0_i32_0 = arith.constant 0 : i32
    %c0_i32_1 = arith.constant 0 : i32
    return %c0_i32, %c0_i32_0 : i32, i32
  }
  func.func @transform_3(%arg0: i32) -> (i32, i32) {
    %c0_i32 = arith.constant 0 : i32
    %c0_i32_0 = arith.constant 0 : i32
    %c0_i32_1 = arith.constant 0 : i32
    return %c0_i32, %c0_i32_0 : i32, i32
  }
  func.func @transform_4(%arg0: i32) -> (i32, i32) {
    %c0_i32 = arith.constant 0 : i32
    %c0_i32_0 = arith.constant 0 : i32
    %c0_i32_1 = arith.constant 0 : i32
    return %c0_i32, %c0_i32_0 : i32, i32
  }
  func.func @transform_5(%arg0: i32) -> (i32, i32) {
    %c0_i32 = arith.constant 0 : i32
    %c0_i32_0 = arith.constant 0 : i32
    %c0_i32_1 = arith.constant 0 : i32
    return %c0_i32, %c0_i32_0 : i32, i32
  }
  func.func @transform_6(%arg0: i32) -> (i32, i32) {
    %c0_i32 = arith.constant 0 : i32
    %c0_i32_0 = arith.constant 0 : i32
    %c0_i32_1 = arith.constant 0 : i32
    return %c0_i32, %c0_i32_0 : i32, i32
  }
  func.func @transform_7(%arg0: i32) -> (i32, i32) {
    %c0_i32 = arith.constant 0 : i32
    %c0_i32_0 = arith.constant 0 : i32
    return %arg0, %c0_i32 : i32, i32
  }
}

</mosaic_0001>

<bundles_post_ra>
// kernel: mlp_forward.1
= control target key start
LH: loop header
LB: loop body
LE: loop exit
PB: predicated region body
PF: predicated region fallthrough
CT: control target
= control target key end

     0   :  { %s499_s0 = inlined_call_operand.hbm [shape: f32[8,16], index: 0, kind: input, shape index: {}]   ;;  %s500_s1 = inlined_call_operand.hbm [shape: f32[16,32], index: 1, kind: input, shape index: {}]   ;;  %s501_s2 = inlined_call_operand.vmem [shape: f32[1,32], index: 2, kind: input, shape index: {}]   ;;  %s502_s3 = inlined_call_operand.hbm [shape: f32[32,128], index: 3, kind: input, shape index: {}]   ;;  %s503_s4 = inlined_call_operand.vmem [shape: f32[1,128], index: 4, kind: input, shape index: {}]   ;;  %s504_s5 = inlined_call_operand.vmem [shape: f32[1,128], index: 5, kind: input, shape index: {}]   ;;  %s505_s6 = inlined_call_operand.<no memory space> [shape: f32[1,1], index: 6, kind: input, shape index: {}]   ;;  %s506_s7 = inlined_call_operand.vmem [shape: f32[8,1], index: 7, kind: output, shape index: {}]  }
   0x1   :  { %v12_v0 = vstv %s505_s6 }
   0x2   :  { %13 = vst [vmem:[#allocation2] sm:$0x1] %v12_v0 }
   0x3   :  { %14 = vsyncpa [#allocation4], 0 }
   0x4   :  { %15 = vsyncpa [#allocation6], 0  ;;  %s394_s26 = smov [#allocation5]   ;;  %s324_s30 = scalar_lea.hbm %s500_s1, 256 }
   0x5   :  { %s31_s27 = sshll.u32 %s394_s26, 4  ;;  %p325_p0 = scmp.ne.s32.totalorder %s500_s1, %s324_s30  ;;  %s32_s27 = int_to_ptr.vmem [resolvable:$true] %s31_s27 }
   0x6   :  { %p328_p1 = scmp.lt.u32.totalorder %s324_s30, %s500_s1 }
   0x8   :  { %p330_p2 = pnand %p328_p1, %p325_p0 }
   0xa   :  { %333 = shalt.err (!%p330_p2)
}
   0xb   :  { %s334_s6 = scalar_lea.vmem %s32_s27, 256  ;;  %p339_p4 = scmp.lt.s32.totalorder %s32_s27, %s32_s27 }
   0xc   :  { %p335_p3 = scmp.ne.s32.totalorder %s32_s27, %s334_s6  ;;  %p340_p5 = scmp.lt.s32.totalorder %s334_s6, %s334_s6 }
   0xe   :  { %p341_p6 = por %p340_p5, %p339_p4 }
  0x10   :  { %p342_p7 = pnand %p341_p6, %p335_p3 }
  0x12   :  { %345 = shalt.err (!%p342_p7)
}
  0x13   :  { %s395_s12 = smov 128   ;;  %s396_s13 = smov 8  }
  0x14   :  { %37 = dma.hbm_to_vmem [thread:$0]  %s500_s1, 256, %s32_s27, [#allocation6], %s395_s12, %s395_s12, %s396_s13  }
  0x15   :  { %s397_s16 = smov [#allocation3]   ;;  %s398_s18 = smov [#allocation7]  }
  0x16   :  { %s22_s17 = sshll.u32 %s397_s16, 4  ;;  %s45_s19 = sshll.u32 %s398_s18, 4  ;;  %s23_s17 = int_to_ptr.vmem [resolvable:$true] %s22_s17  ;;  %s46_s19 = int_to_ptr.vmem [resolvable:$true] %s45_s19 }
  0x17   :  { %s346_s22 = scalar_lea.hbm %s499_s0, 128 }
  0x18   :  { %p347_p8 = scmp.ne.s32.totalorder %s499_s0, %s346_s22  ;;  %p350_p9 = scmp.lt.u32.totalorder %s346_s22, %s499_s0 }
  0x1a   :  { %p352_p10 = pnand %p350_p9, %p347_p8 }
  0x1c   :  { %355 = shalt.err (!%p352_p10)
}
  0x1d   :  { %s356_s1 = scalar_lea.vmem %s23_s17, 128  ;;  %p361_p12 = scmp.lt.s32.totalorder %s23_s17, %s23_s17 }
  0x1e   :  { %p357_p11 = scmp.ne.s32.totalorder %s23_s17, %s356_s1  ;;  %p362_p13 = scmp.lt.s32.totalorder %s356_s1, %s356_s1 }
  0x20   :  { %p363_p0 = por %p362_p13, %p361_p12 }
  0x22   :  { %p364_p1 = pnand %p363_p0, %p357_p11 }
  0x24   :  { %367 = shalt.err (!%p364_p1)
}
  0x25   :  { %25 = dma.hbm_to_vmem [thread:$0]  %s499_s0, 128, %s23_s17, [#allocation4]  }
  0x26   :  { %s368_s8 = scalar_lea.hbm %s502_s3, 512 }
  0x27   :  { %p369_p2 = scmp.ne.s32.totalorder %s502_s3, %s368_s8  ;;  %p372_p3 = scmp.lt.u32.totalorder %s368_s8, %s502_s3 }
  0x29   :  { %p374_p4 = pnand %p372_p3, %p369_p2 }
  0x2b   :  { %377 = shalt.err (!%p374_p4)
}
  0x2c   :  { %s378_s14 = scalar_lea.vmem %s46_s19, 512  ;;  %p383_p6 = scmp.lt.s32.totalorder %s46_s19, %s46_s19 }
  0x2d   :  { %p379_p5 = scmp.ne.s32.totalorder %s46_s19, %s378_s14  ;;  %p384_p7 = scmp.lt.s32.totalorder %s378_s14, %s378_s14 }
  0x2f   :  { %p385_p8 = por %p384_p7, %p383_p6 }
  0x31   :  { %p386_p9 = pnand %p385_p8, %p379_p5 }
  0x33   :  { %389 = shalt.err (!%p386_p9)
}
  0x34   :  { %51 = dma.hbm_to_vmem [thread:$0]  %s502_s3, 512, %s46_s19, [#allocation6], %s395_s12, %s395_s12, %s396_s13  }
  0x35   :  { %390 = dma.done.wait [#allocation4], 128  }
  0x36   :  { %391 = vsyncadd [#allocation4], 4294967168 }
  0x37   :  { %392 = dma.done.wait [#allocation6], 768  }
  0x38   :  { %393 = vsyncadd [#allocation6], 4294966528  ;;  %v399_v1 = vmov 0.0|0.0   ;;  %vm400_vm0 = vmmov 0   ;;  %v401_v2 = vmov 0.0   ;;  %v68_v3 = vld [vmem:[#allocation5] sm:$0xff] }
  0x39   :  { %303 = vmatprep.subr.bf16.mxu0 %v399_v1  ;;  %289 = vmatprep.mubr.msk.f32.mxu0 %vm400_vm0, %v401_v2  ;;  %v69_v4 = vld [vmem:[#allocation5 + $0x8] sm:$0xff]  ;;  %v152_v6 = vld [vmem:[#allocation7] sm:$0xff]  ;;  %v153_v7 = vld [vmem:[#allocation7 + $0x8] sm:$0xff]  ;;  %vm77_vm1 = vcmask 130048   ;;  %vm163_vm2 = vcmask 261120   ;;  %vm262_vm3 = vcmask 7168  }
  0x3a   :  { %306 = vmatprep.subr.bf16.mxu1 %v399_v1  ;;  %300 = vmatprep.mubr.msk.f32.mxu1 %vm400_vm0, %v401_v2  ;;  %v304_v5 = vpack.c.bf16 %v69_v4, %v68_v3  ;;  %v307_v8 = vpack.c.bf16 %v153_v7, %v152_v6  ;;  %v67_v9 = vld [vmem:[#allocation3] sm:$0xff]  ;;  %v154_v10 = vld [vmem:[#allocation7 + $0x10] sm:$0xff]  ;;  %v155_v11 = vld [vmem:[#allocation7 + $0x18] sm:$0xff] }
  0x3b   :  { %v310_v12 = vpack.c.bf16 %v155_v11, %v154_v10  ;;  %v270_v13 = vld [vmem:[%s501_s2] ss:$0 sm:$0xff] }
  0x3c   :  { %305 = vmatpush3.bf16.msra.mxu0 %v304_v5  ;;  %308 = vmatpush3.bf16.msra.mxu1 %v307_v8  ;;  %v272_v18 = vld [vmem:[%s503_s4] ss:$0 sm:$0xff] }
  0x3d   :  { %309 = vmatprep.subr.bf16.mxu1 %v399_v1  ;;  %v274_v22 = vld [vmem:[%s504_s5] ss:$0 sm:$0xff] }
  0x3e   :  { %v275_v25 = vld [vmem:[#allocation2] ss:$0 sm:$0xff] }
  0x3f   :  { %290 = vmatmul.mubr.msk.f32.vlgmr.msra.gmra.mrb[0].mxu0 %vm77_vm1, %v67_v9 }
  0x40   :  { %311 = vmatpush3.bf16.msra.mxu1 %v310_v12 }
 0x112   :  { %v147_v14 = vpop.f32.mrb[0].mxu0 }
 0x113   :  { %v148_v15 = vadd.f32 %v270_v13, %v147_v14  ;;  %v291_v16 = vpop.f32.mrb[1].mxu0 }
 0x115   :  { %v151_v17 = vmax.f32 %v148_v15, 0.0 }
 0x117   :  { %301 = vmatmul.mubr.msk.f32.vlgmr.msra.gmra.mrb[0].mxu1 %vm163_vm2, %v151_v17 }
 0x1ea   :  { %v233_v19 = vpop.f32.mrb[0].mxu1 }
 0x1eb   :  { %v234_v20 = vadd.f32 %v272_v18, %v233_v19  ;;  %v302_v21 = vpop.f32.mrb[1].mxu1 }
 0x1ed   :  { %v237_v23 = vmax.f32 %v234_v20, 0.0 }
 0x1ef   :  { %v245_v24 = vmul.f32 %v274_v22, %v237_v23 }
 0x1f1   :  { %246 = vadd.xlane.f32.xlu0 %v245_v24 }
 0x27e   :  { %v247_v26 = vpop.xlane.xlu0 %246 }
 0x27f   :  { %v255_v27 = vadd.f32 %v275_v25, %v247_v26 }
 0x281   :  { %v276_v28 = vmul.f32 -1.442695, %v255_v27 }
 0x283   :  { %320 = vpow2.f32 %v276_v28 }
 0x28d   :  { %v321_v29 = vpop.eup %320 }
 0x28e   :  { %v259_v30 = vadd.f32 1.0, %v321_v29 }
 0x290   :  { %322 = vrcp.f32 %v259_v30 }
 0x29a   :  { %v323_v31 = vpop.eup %322 }
 0x29b   :  { %263 = vst.msk [vmem:[%s506_s7] sm:$0xff] %vm262_vm3, %v323_v31 }
 0x29c   :  { %268 = vsyncpa [#allocation4], 1 }
 0x29d   :  { %269 = vsyncpa [#allocation6], 1 }

</bundles_post_ra>
